<compile_context>
chip_gen: v5e
topology: v5e:2x2
jax: 0.10.0
libtpu: 0.0.40
codegen_flags: <defaults>
</compile_context>

<pallas_src>
import jax
import jax.numpy as jnp
import numpy as np
from jax.experimental import pallas as pl
from jax.experimental.pallas import tpu as pltpu

TL_MAX = 4096   # max lane tile; 8*TL spatial elements per grid step (sweepable)


def _choose_tiling(N, tl_max):
    """Pick lane tile TL (multiple of 128) and padded spatial size Np.

    Prefers a tile whose chunk (8*TL) divides N exactly (no padding copy --
    the common case for real BraTS volumes, e.g. 160*192*128).  Otherwise N
    is zero-padded up to a multiple of 1024 (= 8*128).
    """
    tl_max = max(128, (int(tl_max) // 128) * 128)
    for tl in range(tl_max, 127, -128):
        if N % (8 * tl) == 0:
            return tl, N
    Np = ((N + 1023) // 1024) * 1024
    for tl in range(tl_max, 127, -128):
        if Np % (8 * tl) == 0:
            return tl, Np
    return 128, Np


def _stats_kernel(inp_ref, vae_ref, u_ref, t_ref, out_ref):
    """Fused per-(batch, core-split, spatial-chunk) statistics.

    out_ref is a dense (11, 8, TL) f32 accumulator, resident across the
    spatial grid axis (program_id(2)):
      rows 0:3  = running sum of unet logits            (wt / tc / et)
      rows 3:6  = running sum of labels
      rows 6:9  = running sum of unet * label
      row  9    = running sum of softmax_c(unet)*label  (boundary / surface)
      row  10   = running sum of (inp - vae_out)^2      (L2)
    """
    s = pl.program_id(2)

    @pl.when(s == 0)
    def _init():
        out_ref[...] = jnp.zeros_like(out_ref)

    # in-kernel cast (inputs may be bf16/f16; cast rides the VPU slot)
    a = inp_ref[...].astype(jnp.float32)   # (C, 8, TL)
    v = vae_ref[...].astype(jnp.float32)   # (C, 8, TL)
    u = u_ref[...].astype(jnp.float32)     # (3, 8, TL)
    t = t_ref[...].astype(jnp.float32)     # (3, 8, TL)

    d = a - v
    l2 = jnp.sum(d * d, axis=0)            # (8, TL): leading-axis adds, no XLU
    ut = u * t

    # channel softmax over three fully dense (8, TL) planes (VPU + EUP only)
    u0, u1, u2 = u[0], u[1], u[2]
    m = jnp.maximum(u0, jnp.maximum(u1, u2))
    e0 = jnp.exp(u0 - m)
    e1 = jnp.exp(u1 - m)
    e2 = jnp.exp(u2 - m)
    inv = pl.reciprocal(e0 + e1 + e2, approx=False)
    pt = (e0 * t[0] + e1 * t[1] + e2 * t[2]) * inv

    # blocked accumulation straight into the packed, dense output slab
    out_ref[0:3] += u
    out_ref[3:6] += t
    out_ref[6:9] += ut
    out_ref[9] += pt
    out_ref[10] += l2


def _fused_stats(inp5, vae5, u5, t5, *, TL, NC, ns_inner):
    B, C = inp5.shape[0], inp5.shape[1]
    in_bytes = sum(int(np.prod(a.shape)) * a.dtype.itemsize
                   for a in (inp5, vae5, u5, t5))
    out_bytes = B * NC * 11 * 8 * TL * 4
    n_total = B * NC * ns_inner * 8 * TL
    cost = pl.CostEstimate(flops=int(n_total * (3 * C + 30)),
                           transcendentals=int(3 * n_total),
                           bytes_accessed=int(in_bytes + out_bytes))

    vol_map = lambda b, c, s: (b, 0, c * ns_inner + s, 0, 0)

    return pl.pallas_call(
        _stats_kernel,
        out_shape=jax.ShapeDtypeStruct((B, NC, 11, 8, TL), jnp.float32),
        grid_spec=pltpu.PrefetchScalarGridSpec(
            num_scalar_prefetch=0,
            grid=(B, NC, ns_inner),
            in_specs=[
                pl.BlockSpec((None, C, None, 8, TL), vol_map),
                pl.BlockSpec((None, C, None, 8, TL), vol_map),
                pl.BlockSpec((None, 3, None, 8, TL), vol_map),
                pl.BlockSpec((None, 3, None, 8, TL), vol_map),
            ],
            out_specs=pl.BlockSpec((None, None, 11, 8, TL),
                                   lambda b, c, s: (b, c, 0, 0, 0)),
        ),
        compiler_params=pltpu.CompilerParams(
            dimension_semantics=("parallel", "parallel", "arbitrary")),
        cost_estimate=cost,
    )(inp5, vae5, u5, t5)


# ------------------------------- VaeLoss ------------------------------------
def vae_loss(inp, vae_out, unet_out, label, z_mean, z_var,
             weight_L2=0.1, weight_KL=0.1, tl_max=TL_MAX):
    B, C, H, W, D = inp.shape
    assert unet_out.shape[1] == 3 and label.shape[1] == 3
    N = H * W * D

    TL, Np = _choose_tiling(N, tl_max)
    chunk = 8 * TL
    ns = Np // chunk
    NC = 2 if (ns >= 2 and ns % 2 == 0) else 1     # core-split axis (v7x 2 TCs)
    ns_inner = ns // NC

    def prep(x, c):
        x = x.reshape(B, c, N)                      # metadata-only reshape
        if Np != N:
            # TODO(synk): zero-pad copy only when no clean 8*128k divisor tile
            # exists; exact (padded voxels contribute 0 to every statistic).
            x = jnp.pad(x, ((0, 0), (0, 0), (0, Np - N)))
        return x.reshape(B, c, ns, 8, TL)           # densify sublanes

    stats = _fused_stats(prep(inp, C), prep(vae_out, C),
                         prep(unet_out, 3), prep(label, 3),
                         TL=TL, NC=NC, ns_inner=ns_inner)

    red = jnp.sum(stats, axis=(1, 3, 4))            # (B, 11) tiny XLA reduce
    Sp, St, Spt = red[:, 0:3], red[:, 3:6], red[:, 6:9]
    boundary_loss = jnp.sum(red[:, 9]) / (B * 3 * N)
    loss_L2 = jnp.sum(red[:, 10]) / (B * C * N)

    # KL is tiny (B x latent); plain JAX (was redundant per-batch kernel work)
    zm = z_mean.astype(jnp.float32)
    zv = z_var.astype(jnp.float32)
    loss_KL = jnp.sum(jnp.exp(zv) + zm * zm - 1.0 - zv) / N

    def weighted_dice_loss(sp, st, spt, mean, smoothing=1.0):
        w1 = 1.0 / mean ** 2
        w0 = 1.0 / (1.0 - mean) ** 2
        i1 = spt                            # per-batch sum(pred*target)
        i0 = N - sp - st + spt              # per-batch sum((1-pred)*(1-target))
        inter = w0 * i0 + w1 * i1
        u1 = jnp.sum(sp) + jnp.sum(st)      # global union_1
        u0 = 2.0 * B * N - u1               # global union_0
        union = w0 * u0 + w1 * u1
        dice = (2.0 * inter + smoothing) / (union + smoothing)
        dice = jnp.where(jnp.isnan(dice), 1.0, dice)
        return 1.0 - jnp.mean(dice)

    dice_loss = (weighted_dice_loss(Sp[:, 0], St[:, 0], Spt[:, 0], 0.05)
                 + weighted_dice_loss(Sp[:, 1], St[:, 1], Spt[:, 1], 0.02)
                 + weighted_dice_loss(Sp[:, 2], St[:, 2], Spt[:, 2], 0.01)) / 5.0

    return boundary_loss + dice_loss + weight_L2 * loss_L2 + weight_KL * loss_KL


# ------------------------ pure-JAX reference (check) ------------------------
def vae_loss_ref(inp, vae_out, unet_out, label, z_mean, z_var,
                 weight_L2=0.1, weight_KL=0.1):
    B, C, H, W, D = inp.shape
    n = H * W * D
    loss_L2 = jnp.mean((inp - vae_out) ** 2)
    loss_KL = jnp.sum(jnp.exp(z_var) + z_mean ** 2 - 1.0 - z_var) / n
    probs = jax.nn.softmax(unet_out, axis=1)
    boundary = jnp.mean(probs * label)

    def wdice(pred, target, mean):
        w1 = 1 / mean ** 2
        w0 = 1 / (1 - mean) ** 2
        i1 = jnp.sum(pred * target, axis=(1, 2, 3))
        i0 = jnp.sum((1 - pred) * (1 - target), axis=(1, 2, 3))
        inter = w0 * i0 + w1 * i1
        u1 = jnp.sum(pred) + jnp.sum(target)
        u0 = jnp.sum(1 - pred) + jnp.sum(1 - target)
        union = w0 * u0 + w1 * u1
        dice = (2 * inter + 1.0) / (union + 1.0)
        dice = jnp.where(jnp.isnan(dice), 1.0, dice)
        return 1 - jnp.mean(dice)

    dice = (wdice(unet_out[:, 0], label[:, 0], 0.05)
            + wdice(unet_out[:, 1], label[:, 1], 0.02)
            + wdice(unet_out[:, 2], label[:, 2], 0.01)) / 5
    return boundary + dice + weight_L2 * loss_L2 + weight_KL * loss_KL


if __name__ == "__main__":
    key = jax.random.PRNGKey(0)
    keys = jax.random.split(key, 12)
    B, C, L = 2, 4, 128   # VaeLoss has no trainable params

    def make_inputs(ks, H, W, D):
        inp = jax.random.normal(ks[0], (B, C, H, W, D), jnp.float32)
        vae = jax.random.normal(ks[1], (B, C, H, W, D), jnp.float32)
        unet = jax.random.normal(ks[2], (B, 3, H, W, D), jnp.float32)
        lab = (jax.random.uniform(ks[3], (B, 3, H, W, D)) > 0.5).astype(jnp.float32)
        zm = 0.1 * jax.random.normal(ks[4], (B, L), jnp.float32)
        zv = 0.1 * jax.random.normal(ks[5], (B, L), jnp.float32)
        return inp, vae, unet, lab, zm, zv

    # 1) exactly divisible shape (N = 16^3 = 4096 -> TL=512, ns=1, no padding)
    args = make_inputs(keys[0:6], 16, 16, 16)
    ref = jax.block_until_ready(vae_loss_ref(*args))
    out = jax.block_until_ready(vae_loss(*args))
    np.testing.assert_allclose(np.asarray(out), np.asarray(ref),
                               rtol=2e-3, atol=2e-3)

    # 2) multi-step accumulation + core-split path: TL=128 -> ns=4, NC=2
    out2 = jax.block_until_ready(vae_loss(*args, tl_max=128))
    np.testing.assert_allclose(np.asarray(out2), np.asarray(ref),
                               rtol=2e-3, atol=2e-3)

    # 3) ragged shape (N = 7*9*11 = 693): zero-padded to 1024, TL=128
    args3 = make_inputs(keys[6:12], 7, 9, 11)
    ref3 = jax.block_until_ready(vae_loss_ref(*args3))
    out3 = jax.block_until_ready(vae_loss(*args3))
    np.testing.assert_allclose(np.asarray(out3), np.asarray(ref3),
                               rtol=2e-3, atol=2e-3)

    print("KERNEL_OK")
</pallas_src>

<mosaic_0001>
module attributes {stable_mosaic.version = 11 : i64} {
  func.func @_stats_kernel(%arg0: i32, %arg1: i32, %arg2: i32, %arg3: memref<1x4x1x8x512xf32, #tpu.memory_space<vmem>>, %arg4: memref<1x4x1x8x512xf32, #tpu.memory_space<vmem>>, %arg5: memref<1x3x1x8x512xf32, #tpu.memory_space<vmem>>, %arg6: memref<1x3x1x8x512xf32, #tpu.memory_space<vmem>>, %arg7: memref<1x1x11x8x512xf32, #tpu.memory_space<vmem>>) attributes {dimension_semantics = [#tpu.dimension_semantics<parallel>, #tpu.dimension_semantics<parallel>, #tpu.dimension_semantics<arbitrary>], iteration_bounds = array<i64: 2, 1, 1>, scalar_prefetch = 0 : i64, scratch_operands = 0 : i64, tpu.core_type = #tpu.core_type<tc>, window_params = [{transform_indices = @transform_0, window_bounds = array<i64: 1, 4, 1, 8, 512>}, {transform_indices = @transform_1, window_bounds = array<i64: 1, 4, 1, 8, 512>}, {transform_indices = @transform_2, window_bounds = array<i64: 1, 3, 1, 8, 512>}, {transform_indices = @transform_3, window_bounds = array<i64: 1, 3, 1, 8, 512>}, {transform_indices = @transform_4, window_bounds = array<i64: 1, 1, 11, 8, 512>}]} {
    %c0_i32 = arith.constant 0 : i32
    %0 = arith.cmpi eq, %arg2, %c0_i32 : i32
    %1 = arith.extui %0 : i1 to i32
    %c0_i32_0 = arith.constant 0 : i32
    %2 = arith.cmpi ne, %1, %c0_i32_0 : i32
    scf.if %2 {
      %cst_66 = arith.constant 0.000000e+00 : f32
      %74 = vector.broadcast %cst_66 : f32 to vector<11x8x512xf32>
      %c0_67 = arith.constant 0 : index
      %c0_68 = arith.constant 0 : index
      %c0_69 = arith.constant 0 : index
      %c0_70 = arith.constant 0 : index
      %c0_71 = arith.constant 0 : index
      %75 = vector.load %arg7[%c0_67, %c0_68, %c0_69, %c0_70, %c0_71] : memref<1x1x11x8x512xf32, #tpu.memory_space<vmem>>, vector<1x1x11x8x512xf32>
      %76 = vector.shape_cast %75 : vector<1x1x11x8x512xf32> to vector<11x8x512xf32>
      %77 = vector.shape_cast %74 : vector<11x8x512xf32> to vector<1x1x11x8x512xf32>
      tpu.vector_store %arg7[%c0_67, %c0_68, %c0_69, %c0_70, %c0_71], %77 {strides = array<i32>} : memref<1x1x11x8x512xf32, #tpu.memory_space<vmem>>, vector<1x1x11x8x512xf32>,
    } else {
    }
    %c0 = arith.constant 0 : index
    %c0_1 = arith.constant 0 : index
    %c0_2 = arith.constant 0 : index
    %c0_3 = arith.constant 0 : index
    %c0_4 = arith.constant 0 : index
    %3 = vector.load %arg3[%c0, %c0_1, %c0_2, %c0_3, %c0_4] : memref<1x4x1x8x512xf32, #tpu.memory_space<vmem>>, vector<1x4x1x8x512xf32>
    %4 = vector.shape_cast %3 : vector<1x4x1x8x512xf32> to vector<4x8x512xf32>
    %c0_5 = arith.constant 0 : index
    %c0_6 = arith.constant 0 : index
    %c0_7 = arith.constant 0 : index
    %c0_8 = arith.constant 0 : index
    %c0_9 = arith.constant 0 : index
    %5 = vector.load %arg4[%c0_5, %c0_6, %c0_7, %c0_8, %c0_9] : memref<1x4x1x8x512xf32, #tpu.memory_space<vmem>>, vector<1x4x1x8x512xf32>
    %6 = vector.shape_cast %5 : vector<1x4x1x8x512xf32> to vector<4x8x512xf32>
    %c0_10 = arith.constant 0 : index
    %c0_11 = arith.constant 0 : index
    %c0_12 = arith.constant 0 : index
    %c0_13 = arith.constant 0 : index
    %c0_14 = arith.constant 0 : index
    %7 = vector.load %arg5[%c0_10, %c0_11, %c0_12, %c0_13, %c0_14] : memref<1x3x1x8x512xf32, #tpu.memory_space<vmem>>, vector<1x3x1x8x512xf32>
    %8 = vector.shape_cast %7 : vector<1x3x1x8x512xf32> to vector<3x8x512xf32>
    %c0_15 = arith.constant 0 : index
    %c0_16 = arith.constant 0 : index
    %c0_17 = arith.constant 0 : index
    %c0_18 = arith.constant 0 : index
    %c0_19 = arith.constant 0 : index
    %9 = vector.load %arg6[%c0_15, %c0_16, %c0_17, %c0_18, %c0_19] : memref<1x3x1x8x512xf32, #tpu.memory_space<vmem>>, vector<1x3x1x8x512xf32>
    %10 = vector.shape_cast %9 : vector<1x3x1x8x512xf32> to vector<3x8x512xf32>
    %11 = arith.subf %4, %6 : vector<4x8x512xf32>
    %12 = arith.mulf %11, %11 : vector<4x8x512xf32>
    %cst = arith.constant dense<0.000000e+00> : vector<8x512xf32>
    %13 = vector.multi_reduction <add>, %12, %cst [0] : vector<4x8x512xf32> to vector<8x512xf32>
    %14 = arith.mulf %8, %10 : vector<3x8x512xf32>
    %15 = vector.extract_strided_slice %8 {offsets = [0, 0, 0], sizes = [1, 8, 512], strides = [1, 1, 1]} : vector<3x8x512xf32> to vector<1x8x512xf32>
    %16 = vector.shape_cast %15 : vector<1x8x512xf32> to vector<8x512xf32>
    %17 = vector.extract_strided_slice %8 {offsets = [1, 0, 0], sizes = [1, 8, 512], strides = [1, 1, 1]} : vector<3x8x512xf32> to vector<1x8x512xf32>
    %18 = vector.shape_cast %17 : vector<1x8x512xf32> to vector<8x512xf32>
    %19 = vector.extract_strided_slice %8 {offsets = [2, 0, 0], sizes = [1, 8, 512], strides = [1, 1, 1]} : vector<3x8x512xf32> to vector<1x8x512xf32>
    %20 = vector.shape_cast %19 : vector<1x8x512xf32> to vector<8x512xf32>
    %21 = arith.maximumf %18, %20 : vector<8x512xf32>
    %22 = arith.maximumf %16, %21 : vector<8x512xf32>
    %23 = arith.subf %16, %22 : vector<8x512xf32>
    %24 = math.exp %23 : vector<8x512xf32>
    %25 = arith.subf %18, %22 : vector<8x512xf32>
    %26 = math.exp %25 : vector<8x512xf32>
    %27 = arith.subf %20, %22 : vector<8x512xf32>
    %28 = math.exp %27 : vector<8x512xf32>
    %29 = arith.addf %24, %26 : vector<8x512xf32>
    %30 = arith.addf %29, %28 : vector<8x512xf32>
    %31 = tpu.reciprocal %30 : vector<8x512xf32> -> vector<8x512xf32>
    %32 = vector.extract_strided_slice %10 {offsets = [0, 0, 0], sizes = [1, 8, 512], strides = [1, 1, 1]} : vector<3x8x512xf32> to vector<1x8x512xf32>
    %33 = vector.shape_cast %32 : vector<1x8x512xf32> to vector<8x512xf32>
    %34 = arith.mulf %24, %33 : vector<8x512xf32>
    %35 = vector.extract_strided_slice %10 {offsets = [1, 0, 0], sizes = [1, 8, 512], strides = [1, 1, 1]} : vector<3x8x512xf32> to vector<1x8x512xf32>
    %36 = vector.shape_cast %35 : vector<1x8x512xf32> to vector<8x512xf32>
    %37 = arith.mulf %26, %36 : vector<8x512xf32>
    %38 = arith.addf %34, %37 : vector<8x512xf32>
    %39 = vector.extract_strided_slice %10 {offsets = [2, 0, 0], sizes = [1, 8, 512], strides = [1, 1, 1]} : vector<3x8x512xf32> to vector<1x8x512xf32>
    %40 = vector.shape_cast %39 : vector<1x8x512xf32> to vector<8x512xf32>
    %41 = arith.mulf %28, %40 : vector<8x512xf32>
    %42 = arith.addf %38, %41 : vector<8x512xf32>
    %43 = arith.mulf %42, %31 : vector<8x512xf32>
    %c0_20 = arith.constant 0 : index
    %c0_21 = arith.constant 0 : index
    %c0_22 = arith.constant 0 : index
    %c0_23 = arith.constant 0 : index
    %c0_24 = arith.constant 0 : index
    %44 = vector.load %arg7[%c0_20, %c0_21, %c0_22, %c0_23, %c0_24] : memref<1x1x11x8x512xf32, #tpu.memory_space<vmem>>, vector<1x1x3x8x512xf32>
    %45 = vector.shape_cast %44 : vector<1x1x3x8x512xf32> to vector<3x8x512xf32>
    %46 = arith.addf %45, %8 : vector<3x8x512xf32>
    %c0_25 = arith.constant 0 : index
    %c0_26 = arith.constant 0 : index
    %c0_27 = arith.constant 0 : index
    %c0_28 = arith.constant 0 : index
    %c0_29 = arith.constant 0 : index
    %47 = vector.load %arg7[%c0_25, %c0_26, %c0_27, %c0_28, %c0_29] : memref<1x1x11x8x512xf32, #tpu.memory_space<vmem>>, vector<1x1x3x8x512xf32>
    %48 = vector.shape_cast %47 : vector<1x1x3x8x512xf32> to vector<3x8x512xf32>
    %49 = vector.shape_cast %46 : vector<3x8x512xf32> to vector<1x1x3x8x512xf32>
    tpu.vector_store %arg7[%c0_25, %c0_26, %c0_27, %c0_28, %c0_29], %49 {strides = array<i32>} : memref<1x1x11x8x512xf32, #tpu.memory_space<vmem>>, vector<1x1x3x8x512xf32>,
    %c0_30 = arith.constant 0 : index
    %c0_31 = arith.constant 0 : index
    %c3 = arith.constant 3 : index
    %c0_32 = arith.constant 0 : index
    %c0_33 = arith.constant 0 : index
    %50 = vector.load %arg7[%c0_30, %c0_31, %c3, %c0_32, %c0_33] : memref<1x1x11x8x512xf32, #tpu.memory_space<vmem>>, vector<1x1x3x8x512xf32>
    %51 = vector.shape_cast %50 : vector<1x1x3x8x512xf32> to vector<3x8x512xf32>
    %52 = arith.addf %51, %10 : vector<3x8x512xf32>
    %c0_34 = arith.constant 0 : index
    %c0_35 = arith.constant 0 : index
    %c3_36 = arith.constant 3 : index
    %c0_37 = arith.constant 0 : index
    %c0_38 = arith.constant 0 : index
    %53 = vector.load %arg7[%c0_34, %c0_35, %c3_36, %c0_37, %c0_38] : memref<1x1x11x8x512xf32, #tpu.memory_space<vmem>>, vector<1x1x3x8x512xf32>
    %54 = vector.shape_cast %53 : vector<1x1x3x8x512xf32> to vector<3x8x512xf32>
    %55 = vector.shape_cast %52 : vector<3x8x512xf32> to vector<1x1x3x8x512xf32>
    tpu.vector_store %arg7[%c0_34, %c0_35, %c3_36, %c0_37, %c0_38], %55 {strides = array<i32>} : memref<1x1x11x8x512xf32, #tpu.memory_space<vmem>>, vector<1x1x3x8x512xf32>,
    %c0_39 = arith.constant 0 : index
    %c0_40 = arith.constant 0 : index
    %c6 = arith.constant 6 : index
    %c0_41 = arith.constant 0 : index
    %c0_42 = arith.constant 0 : index
    %56 = vector.load %arg7[%c0_39, %c0_40, %c6, %c0_41, %c0_42] : memref<1x1x11x8x512xf32, #tpu.memory_space<vmem>>, vector<1x1x3x8x512xf32>
    %57 = vector.shape_cast %56 : vector<1x1x3x8x512xf32> to vector<3x8x512xf32>
    %58 = arith.addf %57, %14 : vector<3x8x512xf32>
    %c0_43 = arith.constant 0 : index
    %c0_44 = arith.constant 0 : index
    %c6_45 = arith.constant 6 : index
    %c0_46 = arith.constant 0 : index
    %c0_47 = arith.constant 0 : index
    %59 = vector.load %arg7[%c0_43, %c0_44, %c6_45, %c0_46, %c0_47] : memref<1x1x11x8x512xf32, #tpu.memory_space<vmem>>, vector<1x1x3x8x512xf32>
    %60 = vector.shape_cast %59 : vector<1x1x3x8x512xf32> to vector<3x8x512xf32>
    %61 = vector.shape_cast %58 : vector<3x8x512xf32> to vector<1x1x3x8x512xf32>
    tpu.vector_store %arg7[%c0_43, %c0_44, %c6_45, %c0_46, %c0_47], %61 {strides = array<i32>} : memref<1x1x11x8x512xf32, #tpu.memory_space<vmem>>, vector<1x1x3x8x512xf32>,
    %c0_48 = arith.constant 0 : index
    %c0_49 = arith.constant 0 : index
    %c9 = arith.constant 9 : index
    %c0_50 = arith.constant 0 : index
    %c0_51 = arith.constant 0 : index
    %62 = vector.load %arg7[%c0_48, %c0_49, %c9, %c0_50, %c0_51] : memref<1x1x11x8x512xf32, #tpu.memory_space<vmem>>, vector<1x1x1x8x512xf32>
    %63 = vector.shape_cast %62 : vector<1x1x1x8x512xf32> to vector<8x512xf32>
    %64 = arith.addf %63, %43 : vector<8x512xf32>
    %c0_52 = arith.constant 0 : index
    %c0_53 = arith.constant 0 : index
    %c9_54 = arith.constant 9 : index
    %c0_55 = arith.constant 0 : index
    %c0_56 = arith.constant 0 : index
    %65 = vector.load %arg7[%c0_52, %c0_53, %c9_54, %c0_55, %c0_56] : memref<1x1x11x8x512xf32, #tpu.memory_space<vmem>>, vector<1x1x1x8x512xf32>
    %66 = vector.shape_cast %65 : vector<1x1x1x8x512xf32> to vector<8x512xf32>
    %67 = vector.shape_cast %64 : vector<8x512xf32> to vector<1x1x1x8x512xf32>
    tpu.vector_store %arg7[%c0_52, %c0_53, %c9_54, %c0_55, %c0_56], %67 {strides = array<i32>} : memref<1x1x11x8x512xf32, #tpu.memory_space<vmem>>, vector<1x1x1x8x512xf32>,
    %c0_57 = arith.constant 0 : index
    %c0_58 = arith.constant 0 : index
    %c10 = arith.constant 10 : index
    %c0_59 = arith.constant 0 : index
    %c0_60 = arith.constant 0 : index
    %68 = vector.load %arg7[%c0_57, %c0_58, %c10, %c0_59, %c0_60] : memref<1x1x11x8x512xf32, #tpu.memory_space<vmem>>, vector<1x1x1x8x512xf32>
    %69 = vector.shape_cast %68 : vector<1x1x1x8x512xf32> to vector<8x512xf32>
    %70 = arith.addf %69, %13 : vector<8x512xf32>
    %c0_61 = arith.constant 0 : index
    %c0_62 = arith.constant 0 : index
    %c10_63 = arith.constant 10 : index
    %c0_64 = arith.constant 0 : index
    %c0_65 = arith.constant 0 : index
    %71 = vector.load %arg7[%c0_61, %c0_62, %c10_63, %c0_64, %c0_65] : memref<1x1x11x8x512xf32, #tpu.memory_space<vmem>>, vector<1x1x1x8x512xf32>
    %72 = vector.shape_cast %71 : vector<1x1x1x8x512xf32> to vector<8x512xf32>
    %73 = vector.shape_cast %70 : vector<8x512xf32> to vector<1x1x1x8x512xf32>
    tpu.vector_store %arg7[%c0_61, %c0_62, %c10_63, %c0_64, %c0_65], %73 {strides = array<i32>} : memref<1x1x11x8x512xf32, #tpu.memory_space<vmem>>, vector<1x1x1x8x512xf32>,
    return
  }
  func.func @transform_0(%arg0: i32, %arg1: i32, %arg2: i32) -> (i32, i32, i32, i32, i32) {
    %c1_i32 = arith.constant 1 : i32
    %0 = arith.muli %arg1, %c1_i32 : i32
    %1 = arith.addi %0, %arg2 : i32
    %c0_i32 = arith.constant 0 : i32
    %c0_i32_0 = arith.constant 0 : i32
    %c0_i32_1 = arith.constant 0 : i32
    %c0_i32_2 = arith.constant 0 : i32
    return %arg0, %c0_i32, %1, %c0_i32_0, %c0_i32_1 : i32, i32, i32, i32, i32
  }
  func.func @transform_1(%arg0: i32, %arg1: i32, %arg2: i32) -> (i32, i32, i32, i32, i32) {
    %c1_i32 = arith.constant 1 : i32
    %0 = arith.muli %arg1, %c1_i32 : i32
    %1 = arith.addi %0, %arg2 : i32
    %c0_i32 = arith.constant 0 : i32
    %c0_i32_0 = arith.constant 0 : i32
    %c0_i32_1 = arith.constant 0 : i32
    %c0_i32_2 = arith.constant 0 : i32
    return %arg0, %c0_i32, %1, %c0_i32_0, %c0_i32_1 : i32, i32, i32, i32, i32
  }
  func.func @transform_2(%arg0: i32, %arg1: i32, %arg2: i32) -> (i32, i32, i32, i32, i32) {
    %c1_i32 = arith.constant 1 : i32
    %0 = arith.muli %arg1, %c1_i32 : i32
    %1 = arith.addi %0, %arg2 : i32
    %c0_i32 = arith.constant 0 : i32
    %c0_i32_0 = arith.constant 0 : i32
    %c0_i32_1 = arith.constant 0 : i32
    %c0_i32_2 = arith.constant 0 : i32
    return %arg0, %c0_i32, %1, %c0_i32_0, %c0_i32_1 : i32, i32, i32, i32, i32
  }
  func.func @transform_3(%arg0: i32, %arg1: i32, %arg2: i32) -> (i32, i32, i32, i32, i32) {
    %c1_i32 = arith.constant 1 : i32
    %0 = arith.muli %arg1, %c1_i32 : i32
    %1 = arith.addi %0, %arg2 : i32
    %c0_i32 = arith.constant 0 : i32
    %c0_i32_0 = arith.constant 0 : i32
    %c0_i32_1 = arith.constant 0 : i32
    %c0_i32_2 = arith.constant 0 : i32
    return %arg0, %c0_i32, %1, %c0_i32_0, %c0_i32_1 : i32, i32, i32, i32, i32
  }
  func.func @transform_4(%arg0: i32, %arg1: i32, %arg2: i32) -> (i32, i32, i32, i32, i32) {
    %c0_i32 = arith.constant 0 : i32
    %c0_i32_0 = arith.constant 0 : i32
    %c0_i32_1 = arith.constant 0 : i32
    %c0_i32_2 = arith.constant 0 : i32
    return %arg0, %arg1, %c0_i32, %c0_i32_0, %c0_i32_1 : i32, i32, i32, i32, i32
  }
}

</mosaic_0001>

<bundles_post_ra>
// kernel: tpu_custom_call.1
= control target key start
LH: loop header
LB: loop body
LE: loop exit
PB: predicated region body
PF: predicated region fallthrough
CT: control target
= control target key end

     0   :  { %s2005_s0 = inlined_call_operand.hbm [shape: f32[2,4,1,8,512], index: 0, kind: input, shape index: {}]   ;;  %s2006_s1 = inlined_call_operand.hbm [shape: f32[2,4,1,8,512], index: 1, kind: input, shape index: {}]   ;;  %s2007_s2 = inlined_call_operand.hbm [shape: f32[2,3,1,8,512], index: 2, kind: input, shape index: {}]   ;;  %s2008_s3 = inlined_call_operand.hbm [shape: f32[2,3,1,8,512], index: 3, kind: input, shape index: {}]   ;;  %s2009_s4 = inlined_call_operand.hbm [shape: f32[2,1,11,8,512], index: 4, kind: output, shape index: {}]  }
   0x1   :  { %2014 = sst [smem:[#allocation19_spill]] %s2005_s0 }
   0x2   :  { %2015 = sst [smem:[#allocation20_spill]] %s2006_s1 }
   0x3   :  { %9 = vsyncpa [#allocation3], 0 }
   0x4   :  { %11 = vsyncpa [#allocation3 + $0x1], 0 }
   0x5   :  { %12 = vsyncpa [#allocation6], 0 }
   0x6   :  { %14 = vsyncpa [#allocation6 + $0x1], 0 }
   0x7   :  { %15 = vsyncpa [#allocation9], 0 }
   0x8   :  { %17 = vsyncpa [#allocation9 + $0x1], 0 }
   0x9   :  { %18 = vsyncpa [#allocation4], 0 }
   0xa   :  { %20 = vsyncpa [#allocation4 + $0x1], 0  ;;  %s1455_s15 = smov 0   ;;  %s1457_s16 = smov 0  }
   0xb   :  { %s1459_s17 = smov 0   ;;  %s1461_s18 = smov 0  }
   0xc   :  { %s1463_s19 = smov 0   ;;  %s1465_s20 = smov 0  }
   0xd LB: > { %2016 = sst [smem:[#allocation15_spill]] %s1412_s17  ;;  %s1486_s21 = sadd.s32 4294967295, %s1424_s20   ;;  %s1424_s20 = sphi %s1465_s20, %s26_s20   ;;  %s1420_s19 = sphi %s1463_s19, %s2051_s19   ;;  %s1416_s18 = sphi %s1461_s18, %s2050_s18   ;;  %s1412_s17 = sphi %s1459_s17, %s2046_s17   ;;  %s1408_s16 = sphi %s1457_s16, %s2049_s16   ;;  %s1404_s15 = sphi %s1455_s15, %s2048_s15  }
   0xe   : > { %2017 = sst [smem:[#allocation16_spill]] %s1424_s20  ;;  %s1010_s22 = sadd.s32 4294967294, %s1424_s20  }
   0xf   : > { %s45_s23 = sadd.s32 1, %s1420_s19  ;;  %s56_s24 = sadd.s32 1, %s1412_s17 }
  0x10   : > { %p47_p0 = scmp.ge.s32.totalorder %s45_s23, 2  ;;  %p63_p1 = scmp.ne.s32.totalorder %s1412_s17, %s1408_s16 }
  0x11   : > { %p64_p2 = scmp.eq.s32.totalorder %s1424_s20, 0  ;;  %p69_p3 = scmp.ne.s32.totalorder %s1408_s16, %s1404_s15 }
  0x12   : > { %s2053_s23 = smov (%p47_p0, %s45_s23), 0  ;;  %p70_p5 = scmp.eq.s32.totalorder %s1486_s21, 0 }
  0x13   : > { %2018 = sst [smem:[#allocation17_spill]] %s2053_s23  ;;  %p1498_p4 = por %p64_p2, %p63_p1 }
  0x14   : > { %s51_s26 = ssub.s32 %s1420_s19, %s2053_s23  ;;  %p185_p6 = scmp.eq.s32.totalorder %s1486_s21, 1 }
  0x15   : > { %p54_p7 = scmp.eq.s32.totalorder %s51_s26, 0  ;;  %p1506_p8 = por %p70_p5, %p69_p3 }
  0x16   : > { %p1510_p9 = por %p185_p6, %p63_p1  ;;  %p191_p10 = scmp.eq.s32.totalorder %s1010_s22, 1 }
  0x17   : > { %s1515_s29 = scalar_select %p54_p7, %s1412_s17, %s56_s24  }
  0x18   : > { %p1517_p11 = por %p191_p10, %p69_p3  ;;  %p1012_p12 = scmp.ge.s32.totalorder %s1424_s20, 2 }
  0x19   : > { %2022 = sst [smem:[#allocation18_spill]] %s1515_s29  ;;  %p1127_p13 = scmp.lt.s32.totalorder %s1424_s20, 2 }
  0x1a   : > { %s1524_s5 = sand.u32 1, %s1412_s17   ;;  %s1091_s7 = sshll.u32 %s1420_s19, 7 }
  0x1b   : > { %s1013_s6 = sshll.u32 %s1524_s5, 7  ;;  %p1530_p0 = pnand %p1127_p13, %p1498_p4 }
  0x1c   : > { %s236_s9 = sand.u32 1, %s1424_s20   ;;  %s2025_s1 = sld [smem:[#allocation20_spill]] }
  0x1d   : > { %s240_s14 = scalar_lea.vmem [#allocation5], %s1013_s6  ;;  %s237_s24 = scalar_lea.sflag [#allocation6], %s236_s9 }
  0x1e   : > { %s251_s22 = sshll.u32 %s240_s14, 4  ;;  %s1426_s25 = smov 512   ;;  %s252_s22 = int_to_ptr.vmem [resolvable:$true] %s251_s22 }
  0x1f   : > { %s1427_s26 = smov 32   ;;  %p1021_p1 = scmp.ge.s32.totalorder %s1424_s20, 1 }
  0x20   : > { %p309_p2 = scmp.lt.s32.totalorder %s1424_s20, 3  ;;  %s2027_s0 = sld [smem:[#allocation19_spill]] }
  0x21   : > { %s215_s9 = scalar_lea.vmem [#allocation2], %s1013_s6  ;;  %s212_s29 = scalar_lea.sflag [#allocation3], %s1524_s5 }
  0x22   : > { %s248_s12 = scalar_lea.hbm %s2025_s1, %s1091_s7  ;;  %p1545_p3 = pnand %p1021_p1, %p309_p2 }
  0x23   : > { %s249_s13 = sshll.u32 %s248_s12, 4  ;;  %s226_s23 = sshll.u32 %s215_s9, 4  ;;  %s250_s13 = int_to_ptr.hbm [resolvable:$true] %s249_s13  ;;  %s227_s23 = int_to_ptr.vmem [resolvable:$true] %s226_s23 }
  0x24   : > { %1116 = dma.hbm_to_vmem [thread:$0]  (!%p1530_p0), %s250_s13, 2048, %s252_s22, %s237_s24, %s1426_s25, %s1426_s25, %s1427_s26  }
  0x25   : > { %s1093_s13 = smul.u32 96, %s1524_s5  ;;  %s287_s17 = scalar_lea.sflag [#allocation9], %s1524_s5 }
  0x26   : > { %s223_s14 = scalar_lea.hbm %s2027_s0, %s1091_s7  ;;  %s1094_s22 = smul.u32 96, %s1420_s19 }
  0x27   : > { %s224_s1 = sshll.u32 %s223_s14, 4  ;;  %s265_s11 = scalar_lea.vmem [#allocation7], %s1093_s13  ;;  %s225_s1 = int_to_ptr.hbm [resolvable:$true] %s224_s1 }
  0x28   : > { %1113 = dma.hbm_to_vmem [thread:$0]  (!%p1530_p0), %s225_s1, 2048, %s227_s23, %s212_s29, %s1426_s25, %s1426_s25, %s1427_s26  }
  0x29   : > { %s273_s7 = scalar_lea.hbm %s2007_s2, %s1094_s22  ;;  %s276_s12 = sshll.u32 %s265_s11, 4  ;;  %s277_s12 = int_to_ptr.vmem [resolvable:$true] %s276_s12 }
  0x2a   : > { %s274_s6 = sshll.u32 %s273_s7, 4  ;;  %s298_s0 = scalar_lea.hbm %s2008_s3, %s1094_s22  ;;  %s275_s6 = int_to_ptr.hbm [resolvable:$true] %s274_s6 }
  0x2b   : > { %1119 = dma.hbm_to_vmem [thread:$0]  (!%p1530_p0), %s275_s6, 1536, %s277_s12, %s237_s24, %s1426_s25, %s1426_s25, %s1427_s26  }
  0x2c   : > { %s299_s1 = sshll.u32 %s298_s0, 4  ;;  %s290_s23 = scalar_lea.vmem [#allocation8], %s1093_s13  ;;  %s300_s1 = int_to_ptr.hbm [resolvable:$true] %s299_s1 }
  0x2d   : > { %s301_s29 = sshll.u32 %s290_s23, 4  ;;  %313 = sbr.rel (%p1545_p3) target bundleno = 126 (0x7e), region = 36  ;;  %s302_s29 = int_to_ptr.vmem [resolvable:$true] %s301_s29 }
  0x2e   : > { %1122 = dma.hbm_to_vmem [thread:$0]  (!%p1530_p0), %s300_s1, 1536, %s302_s29, %s287_s17, %s1426_s25, %s1426_s25, %s1427_s26  }
  0x2f   : > { %s1580_s20 = sand.u32 (!%p1545_p3), 1, %s1408_s16  }
  0x30   : > { %s1022_s0 = sshll.u32 (!%p1545_p3), %s1580_s20, 7  ;;  %s316_s24 = scalar_lea.sflag (!%p1545_p3), [#allocation3], %s1580_s20 }
  0x31   : > { %s1584_s13 = scalar_lea.vmem (!%p1545_p3), [#allocation2], %s1022_s0 }
  0x32   : > { %1387 = dma.done.wait (%p1506_p8), %s316_s24, 2048  }
  0x33   : > { %1389 = vsyncadd (%p1506_p8), %s316_s24, 4294965248  ;;  %s325_s5 = sand.u32 1, %s1486_s21   ;;  %s1591_s25 = scalar_lea.vmem [#allocation5], %s1022_s0 }
  0x34   : > { %s326_s8 = scalar_lea.sflag [#allocation6], %s325_s5 }
  0x35   : > { %1391 = dma.done.wait (%p1506_p8), %s326_s8, 3584  }
  0x36   : > { %1393 = vsyncadd (%p1506_p8), %s326_s8, 4294963712  ;;  %s1097_s26 = smul.u32 96, %s1580_s20  ;;  %s346_s22 = scalar_lea.sflag [#allocation9], %s1580_s20 }
  0x38   : > { %s339_s10 = scalar_lea.vmem [#allocation7], %s1097_s26  ;;  %s1599_s7 = scalar_lea.vmem [#allocation8], %s1097_s26 }
  0x39   : > { %1395 = dma.done.wait (%p1506_p8), %s346_s22, 1536  }
  0x3a   : > { %1397 = vsyncadd (%p1506_p8), %s346_s22, 4294965760  ;;  %s1098_s21 = smul.u32 352, %s1580_s20  ;;  %v1606_v0 = vld [vmem:[%s339_s10] sm:$0xff]  ;;  %v1608_v1 = vld [vmem:[%s339_s10 + $0x8] sm:$0xff]  ;;  %s823_s1 = scalar_lea.sflag [#allocation4], %s1580_s20 }
  0x3b   : > { %v1610_v2 = vld [vmem:[%s339_s10 + $0x10] sm:$0xff]  ;;  %v1612_v3 = vld [vmem:[%s339_s10 + $0x18] sm:$0xff]  ;;  %v1614_v4 = vld [vmem:[%s339_s10 + $0x20] sm:$0xff]  ;;  %s1099_s11 = smul.u32 352, %s1416_s18  ;;  %s1354_s24 = scalar_lea.hbm %s2009_s4, 704 }
  0x3c   : > { %v1616_v5 = vld [vmem:[%s339_s10 + $0x28] sm:$0xff]  ;;  %v1618_v6 = vld [vmem:[%s339_s10 + $0x30] sm:$0xff]  ;;  %v1620_v7 = vld [vmem:[%s339_s10 + $0x38] sm:$0xff]  ;;  %s1624_s27 = scalar_lea.vmem [#allocation10], %s1098_s21 }
  0x3d   : > { %v1622_v8 = vld [vmem:[%s339_s10 + $0x40] sm:$0xff]  ;;  %710 = vst [vmem:[%s1624_s27] sm:$0xff] %v1606_v0  ;;  %v1630_v10 = vld [vmem:[%s339_s10 + $0x48] sm:$0xff]  ;;  %v1632_v11 = vld [vmem:[%s339_s10 + $0x50] sm:$0xff]  ;;  %s836_s18 = scalar_lea.hbm %s2009_s4, %s1099_s11  ;;  %s837_s14 = sshll.u32 %s1624_s27, 4  ;;  %s838_s14 = int_to_ptr.vmem [resolvable:$true] %s837_s14 }
  0x3e   : > { %v554_v9 = vmax.f32 %v1614_v4, %v1622_v8  ;;  %v1634_v12 = vld [vmem:[%s339_s10 + $0x58] sm:$0xff]  ;;  %711 = vst [vmem:[%s1624_s27 + $0x8] sm:$0xff] %v1608_v1  ;;  %v555_v13 = vmax.f32 %v1616_v5, %v1630_v10  ;;  %v556_v14 = vmax.f32 %v1618_v6, %v1632_v11  ;;  %v1656_v21 = vld [vmem:[%s1599_s7] sm:$0xff]  ;;  %v1668_v29 = vld [vmem:[%s1599_s7 + $0x8] sm:$0xff]  ;;  %s839_s9 = sshll.u32 %s836_s18, 4  ;;  %s840_s9 = int_to_ptr.hbm [resolvable:$true] %s839_s9 }
  0x3f   : > { %712 = vst [vmem:[%s1624_s27 + $0x10] sm:$0xff] %v1610_v2  ;;  %v557_v16 = vmax.f32 %v1620_v7, %v1634_v12  ;;  %v1677_v35 = vld [vmem:[%s1599_s7 + $0x10] sm:$0xff]  ;;  %v1680_v36 = vld [vmem:[%s1599_s7 + $0x18] sm:$0xff]  ;;  %v1687_v40 = vld [vmem:[%s1599_s7 + $0x20] sm:$0xff]  ;;  %v542_v55 = vmul.f32 %v1656_v21, %v1606_v0  ;;  %v543_v56 = vmul.f32 %v1668_v29, %v1608_v1  ;;  %s1348_s23 = sshra.s32 %s840_s9, 4  ;;  %s1349_s23 = int_to_ptr.hbm [resolvable:$true] %s1348_s23 }
  0x40   : > { %v558_v15 = vmax.f32 %v1606_v0, %v554_v9  ;;  %713 = vst [vmem:[%s1624_s27 + $0x18] sm:$0xff] %v1612_v3  ;;  %v559_v17 = vmax.f32 %v1608_v1, %v555_v13  ;;  %v560_v18 = vmax.f32 %v1610_v2, %v556_v14  ;;  %v1692_v42 = vld [vmem:[%s1599_s7 + $0x28] sm:$0xff]  ;;  %v1698_v45 = vld [vmem:[%s1599_s7 + $0x30] sm:$0xff]  ;;  %v1701_v46 = vld [vmem:[%s1599_s7 + $0x38] sm:$0xff]  ;;  %v544_v60 = vmul.f32 %v1677_v35, %v1610_v2  ;;  %s1350_s29 = scalar_lea.hbm %s1349_s23, 352  ;;  %p1355_p7 = scmp.lt.s32.totalorder %s1349_s23, %s2009_s4 }
  0x41   : > { %714 = vst [vmem:[%s1624_s27 + $0x20] sm:$0xff] %v1614_v4  ;;  %v561_v20 = vmax.f32 %v1612_v3, %v557_v16  ;;  %v494_v50 = vld [vmem:[%s1599_s7 + $0x40] sm:$0xff]  ;;  %v495_v52 = vld [vmem:[%s1599_s7 + $0x48] sm:$0xff]  ;;  %v496_v54 = vld [vmem:[%s1599_s7 + $0x50] sm:$0xff]  ;;  %v545_v63 = vmul.f32 %v1680_v36, %v1612_v3  ;;  %p1351_p4 = scmp.ne.s32.totalorder %s1349_s23, %s1350_s29  ;;  %p1356_p8 = scmp.lt.s32.totalorder %s1354_s24, %s1350_s29 }
  0x42   : > { %v586_v19 = vsub.f32 %v1622_v8, %v558_v15  ;;  %v562_v22 = vsub.f32 %v1606_v0, %v558_v15  ;;  %715 = vst [vmem:[%s1624_s27 + $0x28] sm:$0xff] %v1616_v5  ;;  %v587_v23 = vsub.f32 %v1630_v10, %v559_v17  ;;  %v588_v24 = vsub.f32 %v1632_v11, %v560_v18  ;;  %v497_v59 = vld [vmem:[%s1599_s7 + $0x58] sm:$0xff] }
  0x43   : > { %v563_v25 = vsub.f32 %v1608_v1, %v559_v17  ;;  %716 = vst [vmem:[%s1624_s27 + $0x30] sm:$0xff] %v1618_v6  ;;  %v589_v27 = vsub.f32 %v1634_v12, %v561_v20  ;;  %v564_v30 = vsub.f32 %v1610_v2, %v560_v18  ;;  %v565_v33 = vsub.f32 %v1612_v3, %v561_v20  ;;  %p1352_p5 = pnand %p1351_p4, %p1510_p9  ;;  %p1357_p10 = por %p1356_p8, %p1355_p7 }
  0x44   : > { %v590_v26 = vmul.f32 1.442695, %v586_v19  ;;  %v566_v28 = vmul.f32 1.442695, %v562_v22  ;;  %717 = vst [vmem:[%s1624_s27 + $0x38] sm:$0xff] %v1620_v7  ;;  %v574_v37 = vsub.f32 %v1614_v4, %v558_v15  ;;  %v575_v38 = vsub.f32 %v1616_v5, %v559_v17 }
  0x45   : > { %v592_v31 = vmul.f32 1.442695, %v587_v23  ;;  %v594_v32 = vmul.f32 1.442695, %v588_v24  ;;  %718 = vst [vmem:[%s1624_s27 + $0x40] sm:$0xff] %v1622_v8  ;;  %v576_v43 = vsub.f32 %v1618_v6, %v560_v18  ;;  %v577_v47 = vsub.f32 %v1620_v7, %v561_v20  ;;  %v458_v24 = vld [vmem:[%s1591_s25] sm:$0xff]  ;;  %p1353_p6 = pneg %p1352_p5 }
  0x46   : > { %1182 = vpow2.f32 %v590_v26  ;;  %v596_v34 = vmul.f32 1.442695, %v589_v27  ;;  %719 = vst [vmem:[%s1624_s27 + $0x48] sm:$0xff] %v1630_v10  ;;  %v568_v39 = vmul.f32 1.442695, %v563_v25  ;;  %v546_v2 = vmul.f32 %v1687_v40, %v1614_v4 }
  0x47   : > { %1184 = vpow2.f32 %v592_v31  ;;  %720 = vst [vmem:[%s1624_s27 + $0x50] sm:$0xff] %v1632_v11  ;;  %v570_v41 = vmul.f32 1.442695, %v564_v30  ;;  %v572_v44 = vmul.f32 1.442695, %v565_v33  ;;  %v547_v3 = vmul.f32 %v1692_v42, %v1616_v5  ;;  %v446_v33 = vld [vmem:[%s1584_s13 + $0x20] sm:$0xff]  ;;  %p1358_p13 = pnand %p1357_p10, %p1353_p6 }
  0x48   : > { %1186 = vpow2.f32 %v594_v32  ;;  %721 = vst [vmem:[%s1624_s27 + $0x58] sm:$0xff] %v1634_v12  ;;  %v578_v48 = vmul.f32 1.442695, %v574_v37  ;;  %v580_v49 = vmul.f32 1.442695, %v575_v38  ;;  %v548_v4 = vmul.f32 %v1698_v45, %v1618_v6 }
  0x49   : > { %1188 = vpow2.f32 %v596_v34  ;;  %1036 = vst [vmem:[%s1624_s27 + $0x60] sm:$0xff] %v1656_v21  ;;  %v582_v51 = vmul.f32 1.442695, %v576_v43  ;;  %v584_v58 = vmul.f32 1.442695, %v577_v47  ;;  %v549_v15 = vmul.f32 %v1701_v46, %v1620_v7  ;;  %v462_v34 = vld [vmem:[%s1591_s25 + $0x20] sm:$0xff] }
  0x4a   : > { %1190 = vpow2.f32 %v566_v28  ;;  %1037 = vst [vmem:[%s1624_s27 + $0x68] sm:$0xff] %v1668_v29  ;;  %v550_v5 = vmul.f32 %v494_v50, %v1622_v8  ;;  %v1757_v18 = vmul.f32 %v495_v52, %v1630_v10  ;;  %v1763_v7 = vmul.f32 %v496_v54, %v1632_v11  ;;  %v442_v8 = vld [vmem:[%s1584_s13] sm:$0xff] }
  0x4b   : > { %1192 = vpow2.f32 %v568_v39  ;;  %1038 = vst [vmem:[%s1624_s27 + $0x70] sm:$0xff] %v1677_v35  ;;  %v450_v43 = vld [vmem:[%s1584_s13 + $0x40] sm:$0xff] }
  0x4c   : > { %v1183_v53 = vpop.eup %1182  ;;  %1194 = vpow2.f32 %v570_v41  ;;  %1039 = vst [vmem:[%s1624_s27 + $0x78] sm:$0xff] %v1680_v36 }
  0x4d   : > { %v1185_v57 = vpop.eup %1184  ;;  %1196 = vpow2.f32 %v572_v44  ;;  %1040 = vst [vmem:[%s1624_s27 + $0x80] sm:$0xff] %v1687_v40  ;;  %v1726_v62 = vmul.f32 %v1183_v53, %v494_v50  ;;  %v466_v44 = vld [vmem:[%s1591_s25 + $0x40] sm:$0xff] }
  0x4e   : > { %v1722_v61 = vpop.eup %1186  ;;  %1198 = vpow2.f32 %v578_v48  ;;  %1041 = vst [vmem:[%s1624_s27 + $0x88] sm:$0xff] %v1692_v42  ;;  %v1734_v1 = vmul.f32 %v1185_v57, %v495_v52 }
  0x4f   : > { %v1730_v0 = vpop.eup %1188  ;;  %1200 = vpow2.f32 %v580_v49  ;;  %1042 = vst [vmem:[%s1624_s27 + $0x90] sm:$0xff] %v1698_v45  ;;  %v1741_v13 = vmul.f32 %v1722_v61, %v496_v54  ;;  %v454_v49 = vld [vmem:[%s1584_s13 + $0x60] sm:$0xff] }
  0x50   : > { %v1191_v9 = vpop.eup %1190  ;;  %1202 = vpow2.f32 %v582_v51  ;;  %1043 = vst [vmem:[%s1624_s27 + $0x98] sm:$0xff] %v1701_v46  ;;  %v1753_v17 = vmul.f32 %v1730_v0, %v497_v59 }
  0x51   : > { %v1193_v14 = vpop.eup %1192  ;;  %1204 = vpow2.f32 %v584_v58  ;;  %1044 = vst [vmem:[%s1624_s27 + $0xa0] sm:$0xff] %v494_v50  ;;  %v662_v20 = vmul.f32 %v1191_v9, %v1656_v21  ;;  %v470_v50 = vld [vmem:[%s1591_s25 + $0x60] sm:$0xff] }
  0x52   : > { %v1195_v16 = vpop.eup %1194  ;;  %v663_v6 = vmul.f32 %v1193_v14, %v1668_v29  ;;  %1045 = vst [vmem:[%s1624_s27 + $0xa8] sm:$0xff] %v495_v52  ;;  %v553_v29 = vmul.f32 %v497_v59, %v1634_v12 }
  0x53   : > { %v1197_v19 = vpop.eup %1196  ;;  %v664_v23 = vmul.f32 %v1195_v16, %v1677_v35  ;;  %1046 = vst [vmem:[%s1624_s27 + $0xb0] sm:$0xff] %v496_v54  ;;  %v1780_v35 = vsub.f32 %v442_v8, %v458_v24 }
  0x54   : > { %v1199_v22 = vpop.eup %1198  ;;  %v665_v25 = vmul.f32 %v1197_v19, %v1680_v36  ;;  %1047 = vst [vmem:[%s1624_s27 + $0xb8] sm:$0xff] %v497_v59 }
  0x55   : > { %v1201_v10 = vpop.eup %1200  ;;  %v598_v21 = vadd.f32 %v1199_v22, %v1191_v9  ;;  %v666_v26 = vmul.f32 %v1199_v22, %v1687_v40  ;;  %1060 = vst [vmem:[%s1624_s27 + $0xc0] sm:$0xff] %v542_v55  ;;  %v451_v22 = vld [vmem:[%s1584_s13 + $0x48] sm:$0xff] }
  0x56   : > { %v1203_v27 = vpop.eup %1202  ;;  %v599_v11 = vadd.f32 %v1201_v10, %v1193_v14  ;;  %v667_v28 = vmul.f32 %v1201_v10, %v1692_v42  ;;  %1061 = vst [vmem:[%s1624_s27 + $0xc8] sm:$0xff] %v543_v56 }
  0x57   : > { %v1205_v30 = vpop.eup %1204  ;;  %v1776_v31 = vadd.f32 %v1183_v53, %v598_v21  ;;  %v670_v32 = vadd.f32 %v666_v26, %v662_v20  ;;  %v600_v36 = vadd.f32 %v1203_v27, %v1195_v16  ;;  %v668_v37 = vmul.f32 %v1203_v27, %v1698_v45  ;;  %1062 = vst [vmem:[%s1624_s27 + $0xd0] sm:$0xff] %v544_v60  ;;  %v447_v16 = vld [vmem:[%s1584_s13 + $0x28] sm:$0xff] }
  0x58   : > { %v601_v38 = vadd.f32 %v1205_v30, %v1197_v19  ;;  %v1784_v39 = vadd.f32 %v1185_v57, %v599_v11  ;;  %v669_v12 = vmul.f32 %v1205_v30, %v1701_v46  ;;  %1063 = vst [vmem:[%s1624_s27 + $0xd8] sm:$0xff] %v545_v63  ;;  %v671_v41 = vadd.f32 %v667_v28, %v663_v6  ;;  %v455_v28 = vld [vmem:[%s1584_s13 + $0x68] sm:$0xff] }
  0x59   : > { %1206 = vrcp.f32 %v1776_v31  ;;  %v617_v40 = vand.u32 2147483648, %v1776_v31  ;;  %1064 = vst [vmem:[%s1624_s27 + $0xe0] sm:$0xff] %v546_v2  ;;  %v615_v42 = vand.u32 2147483647, %v1776_v31  ;;  %v502_v45 = vsub.f32 %v446_v33, %v462_v34 }
  0x5a   : > { %1208 = vrcp.f32 %v1784_v39  ;;  %1065 = vst [vmem:[%s1624_s27 + $0xe8] sm:$0xff] %v547_v3  ;;  %vm611_vm0 = vweird.f32 %v1776_v31  ;;  %v1798_v46 = vadd.f32 %v1726_v62, %v670_v32  ;;  %v629_v47 = vand.u32 2147483647, %v1784_v39 }
  0x5b   : > { %v631_v48 = vand.u32 2147483648, %v1784_v39  ;;  %1066 = vst [vmem:[%s1624_s27 + $0xf0] sm:$0xff] %v548_v4  ;;  %vm625_vm1 = vweird.f32 %v1784_v39  ;;  %v1807_v51 = vadd.f32 %v1722_v61, %v600_v36  ;;  %v672_v52 = vadd.f32 %v668_v37, %v664_v23  ;;  %v467_v23 = vld [vmem:[%s1591_s25 + $0x48] sm:$0xff] }
  0x5c   : > { %v1810_v53 = vadd.f32 %v1730_v0, %v601_v38  ;;  %1067 = vst [vmem:[%s1624_s27 + $0xf8] sm:$0xff] %v549_v15  ;;  %v1813_v54 = vor.u32 1.1754944e-38, %v617_v40  ;;  %v1818_v56 = vadd.f32 %v1734_v1, %v671_v41  ;;  %v673_v57 = vadd.f32 %v669_v12, %v665_v25 }
  0x5d   : > { %v1815_v55 = vor.u32 1.1754944e-38, %v631_v48  ;;  %1068 = vst [vmem:[%s1624_s27 + $0x100] sm:$0xff] %v550_v5  ;;  %vm1821_vm2 = vcmp.eq.f32.partialorder %v615_v42, 8.507059e+37  ;;  %1210 = vrcp.f32 %v1807_v51  ;;  %v645_v59 = vand.u32 2147483648, %v1807_v51  ;;  %v459_v5 = vld [vmem:[%s1591_s25 + $0x8] sm:$0xff] }
  0x5e   : > { %v506_v60 = vsub.f32 %v450_v43, %v466_v44  ;;  %v510_v61 = vsub.f32 %v454_v49, %v470_v50  ;;  %1069 = vst [vmem:[%s1624_s27 + $0x108] sm:$0xff] %v1757_v18  ;;  %vm1831_vm3 = vcmp.eq.f32.partialorder %v629_v47, 8.507059e+37  ;;  %vm639_vm4 = vweird.f32 %v1807_v51  ;;  %v463_v18 = vld [vmem:[%s1591_s25 + $0x28] sm:$0xff]  ;;  %v444_v49 = vld [vmem:[%s1584_s13 + $0x10] sm:$0xff] }
  0x5f   : > { %v1827_v62 = vpop.eup %1206  ;;  %v643_v0 = vand.u32 2147483647, %v1807_v51  ;;  %v1838_v1 = vadd.f32 %v1741_v13, %v672_v52  ;;  %1212 = vrcp.f32 %v1810_v53  ;;  %1070 = vst [vmem:[%s1624_s27 + $0x110] sm:$0xff] %v1763_v7  ;;  %vm653_vm6 = vweird.f32 %v1810_v53  ;;  %v443_v13 = vld [vmem:[%s1584_s13 + $0x8] sm:$0xff] }
  0x60   : > { %v1841_v2 = vpop.eup %1208  ;;  %v607_v9 = vmul.f32 %v1827_v62, %v1776_v31  ;;  %vm612_vm5 = vweird.f32 %v1827_v62  ;;  %v657_v3 = vand.u32 2147483647, %v1810_v53  ;;  %1071 = vst [vmem:[%s1624_s27 + $0x118] sm:$0xff] %v553_v29  ;;  %v1855_v4 = vor.u32 1.1754944e-38, %v645_v59  ;;  %v471_v29 = vld [vmem:[%s1591_s25 + $0x68] sm:$0xff] }
  0x61   : > { %v621_v14 = vmul.f32 %v1841_v2, %v1784_v39  ;;  %vm626_vm7 = vweird.f32 %v1841_v2  ;;  %v659_v15 = vand.u32 2147483648, %v1810_v53  ;;  %v1862_v20 = vadd.f32 %v1753_v17, %v673_v57  ;;  %vm1885_vm10 = vmor %vm611_vm0, %vm612_vm5 }
  0x62   : > { %v608_v19 = vsub.f32 1.0, %v607_v9  ;;  %v514_v6 = vmul.f32 %v1780_v35, %v1780_v35  ;;  %v518_v7 = vmul.f32 %v502_v45, %v502_v45  ;;  %vm1868_vm8 = vcmp.eq.f32.partialorder %v643_v0, 8.507059e+37  ;;  %vm1896_vm12 = vmor %vm625_vm1, %vm626_vm7 }
  0x63   : > { %v622_v8 = vsub.f32 1.0, %v621_v14  ;;  %v1872_v10 = vor.u32 1.1754944e-38, %v659_v15  ;;  %v522_v25 = vmul.f32 %v506_v60, %v506_v60  ;;  %v526_v21 = vmul.f32 %v510_v61, %v510_v61  ;;  %v1211_v26 = vpop.eup %1210  ;;  %v448_v60 = vld [vmem:[%s1584_s13 + $0x30] sm:$0xff] }
  0x64   : > { %v609_v27 = vmul.f32 %v1827_v62, %v608_v19  ;;  %vm1875_vm9 = vcmp.eq.f32.partialorder %v657_v3, 8.507059e+37  ;;  %v530_v11 = vadd.f32 %v518_v7, %v514_v6  ;;  %v499_v30 = vsub.f32 %v443_v13, %v459_v5  ;;  %v460_v61 = vld [vmem:[%s1591_s25 + $0x10] sm:$0xff]  ;;  %v445_v6 = vld [vmem:[%s1584_s13 + $0x18] sm:$0xff] }
  0x65   : > { %v503_v32 = vsub.f32 %v447_v16, %v463_v18  ;;  %v1213_v33 = vpop.eup %1212  ;;  %v623_v35 = vmul.f32 %v1841_v2, %v622_v8  ;;  %v635_v36 = vmul.f32 %v1211_v26, %v1807_v51  ;;  %vm640_vm11 = vweird.f32 %v1211_v26  ;;  %v468_v3 = vld [vmem:[%s1591_s25 + $0x50] sm:$0xff]  ;;  %v461_v7 = vld [vmem:[%s1591_s25 + $0x18] sm:$0xff] }
  0x66   : > { %v507_v37 = vsub.f32 %v451_v22, %v467_v23  ;;  %v610_v38 = vadd.f32 %v1827_v62, %v609_v27  ;;  %v649_v31 = vmul.f32 %v1213_v33, %v1810_v53  ;;  %vm654_vm13 = vweird.f32 %v1213_v33  ;;  %vm1922_vm14 = vmor %vm639_vm4, %vm640_vm11  ;;  %v456_v14 = vld [vmem:[%s1584_s13 + $0x70] sm:$0xff]  ;;  %v453_v27 = vld [vmem:[%s1584_s13 + $0x58] sm:$0xff] }
  0x67   : > { %v531_v40 = vadd.f32 %v530_v11, %v522_v25  ;;  %v624_v41 = vadd.f32 %v1841_v2, %v623_v35  ;;  %v636_v42 = vsub.f32 1.0, %v635_v36  ;;  %v511_v43 = vsub.f32 %v455_v28, %v471_v29  ;;  %vm1932_vm15 = vmor %vm653_vm6, %vm654_vm13  ;;  %v472_v15 = vld [vmem:[%s1591_s25 + $0x70] sm:$0xff] }
  0x68   : > { %v515_v44 = vmul.f32 %v499_v30, %v499_v30  ;;  %v614_v39 = vsel %vm1885_vm10, %v1827_v62, %v610_v38  ;;  %v650_v45 = vsub.f32 1.0, %v649_v31  ;;  %v519_v48 = vmul.f32 %v503_v32, %v503_v32  ;;  %v464_v62 = vld [vmem:[%s1591_s25 + $0x30] sm:$0xff]  ;;  %v469_v30 = vld [vmem:[%s1591_s25 + $0x58] sm:$0xff] }
  0x69   : > { %v532_v47 = vadd.f32 %v531_v40, %v526_v21  ;;  %v619_v50 = vsel %vm1821_vm2, %v1813_v54, %v614_v39  ;;  %v628_v52 = vsel %vm1896_vm12, %v1841_v2, %v624_v41  ;;  %v637_v57 = vmul.f32 %v1211_v26, %v636_v42  ;;  %v452_v2 = vld [vmem:[%s1584_s13 + $0x50] sm:$0xff]  ;;  %v449_v21 = vld [vmem:[%s1584_s13 + $0x38] sm:$0xff] }
  0x6a   : > { %v523_v59 = vmul.f32 %v507_v37, %v507_v37  ;;  %v682_v0 = vmul.f32 %v1798_v46, %v619_v50  ;;  %v633_v9 = vsel %vm1831_vm3, %v1815_v55, %v628_v52  ;;  %v651_v58 = vmul.f32 %v1213_v33, %v650_v45  ;;  %v473_v32 = vld [vmem:[%s1591_s25 + $0x78] sm:$0xff] }
  0x6b   : > { %v683_v13 = vmul.f32 %v1818_v56, %v633_v9  ;;  %v638_v46 = vadd.f32 %v1211_v26, %v637_v57  ;;  %v527_v51 = vmul.f32 %v511_v43, %v511_v43  ;;  %v533_v63 = vadd.f32 %v519_v48, %v515_v44  ;;  %1084 = vst [vmem:[%s1624_s27 + $0x140] sm:$0xff] %v532_v47 }
  0x6c   : > { %v652_v16 = vadd.f32 %v1213_v33, %v651_v58  ;;  %v500_v56 = vsub.f32 %v444_v49, %v460_v61  ;;  %v504_v5 = vsub.f32 %v448_v60, %v464_v62  ;;  %v508_v19 = vsub.f32 %v452_v2, %v468_v3  ;;  %1076 = vst [vmem:[%s1624_s27 + $0x120] sm:$0xff] %v682_v0 }
  0x6d   : > { %v642_v18 = vsel %vm1922_vm14, %v1211_v26, %v638_v46  ;;  %v534_v53 = vadd.f32 %v533_v63, %v523_v59  ;;  %v512_v8 = vsub.f32 %v456_v14, %v472_v15  ;;  %v465_v26 = vld [vmem:[%s1591_s25 + $0x38] sm:$0xff]  ;;  %1077 = vst [vmem:[%s1624_s27 + $0x128] sm:$0xff] %v683_v13  ;;  %v501_v36 = vsub.f32 %v445_v6, %v461_v7 }
  0x6e   : > { %v647_v22 = vsel %vm1868_vm8, %v1855_v4, %v642_v18  ;;  %v656_v23 = vsel %vm1932_vm15, %v1213_v33, %v652_v16  ;;  %v516_v25 = vmul.f32 %v500_v56, %v500_v56  ;;  %v520_v24 = vmul.f32 %v504_v5, %v504_v5  ;;  %v457_v4 = vld [vmem:[%s1584_s13 + $0x78] sm:$0xff] }
  0x6f   : > { %v684_v11 = vmul.f32 %v1838_v1, %v647_v22  ;;  %v661_v28 = vsel %vm1875_vm9, %v1872_v10, %v656_v23  ;;  %v535_v29 = vadd.f32 %v534_v53, %v527_v51  ;;  %v524_v34 = vmul.f32 %v508_v19, %v508_v19 }
  0x70   : > { %v685_v33 = vmul.f32 %v1862_v20, %v661_v28  ;;  %v528_v35 = vmul.f32 %v512_v8, %v512_v8  ;;  %v536_v37 = vadd.f32 %v520_v24, %v516_v25  ;;  %v505_v38 = vsub.f32 %v449_v21, %v465_v26 }
  0x71   : > { %v509_v1 = vsub.f32 %v453_v27, %v469_v30  ;;  %v513_v10 = vsub.f32 %v457_v4, %v473_v32  ;;  %v517_v17 = vmul.f32 %v501_v36, %v501_v36  ;;  %1078 = vst [vmem:[%s1624_s27 + $0x130] sm:$0xff] %v684_v11 }
  0x72   : > { %v537_v12 = vadd.f32 %v536_v37, %v524_v34  ;;  %v521_v31 = vmul.f32 %v505_v38, %v505_v38  ;;  %1079 = vst [vmem:[%s1624_s27 + $0x138] sm:$0xff] %v685_v33 }
  0x73   : > { %v525_v40 = vmul.f32 %v509_v1, %v509_v1  ;;  %1085 = vst [vmem:[%s1624_s27 + $0x148] sm:$0xff] %v535_v29  ;;  %v529_v41 = vmul.f32 %v513_v10, %v513_v10 }
  0x74   : > { %v538_v20 = vadd.f32 %v537_v12, %v528_v35  ;;  %v539_v42 = vadd.f32 %v521_v31, %v517_v17 }
  0x76   : > { %v540_v43 = vadd.f32 %v539_v42, %v525_v40  ;;  %1086 = vst [vmem:[%s1624_s27 + $0x150] sm:$0xff] %v538_v20 }
  0x78   : > { %v541_v44 = vadd.f32 %v540_v43, %v529_v41 }
  0x7a   : > { %1087 = vst [vmem:[%s1624_s27 + $0x158] sm:$0xff] %v541_v44 }
  0x7b   : > { %1361 = shalt.err (!%p1358_p13)
}
  0x7c   : > { %s1428_s20 = smov 512   ;;  %s1429_s8 = smov 32  }
  0x7d   : > { %1108 = dma.vmem_to_hbm [thread:$0]  (%p1510_p9), %s838_s14, 5632, %s840_s9, %s823_s1, %s1428_s20, %s1428_s20, %s1429_s8  }
  0x7e PF: > { %s2044_s25 = sld [smem:[#allocation16_spill]]  ;;  %s854_s26 = sand.u32 1, %s1404_s15  }
  0x7f   : > { %p1124_p0 = pnand %p1012_p12, %p1517_p11  ;;  %s855_s10 = scalar_lea.sflag [#allocation4], %s854_s26 }
  0x81   : > { %p1125_p1 = pneg %p1124_p0 }
  0x83   : > { %1399 = dma.done.wait (%p1125_p1), %s855_s10, 5632  }
  0x84   : > { %1401 = vsyncadd (%p1125_p1), %s855_s10, 4294961664  ;;  %s26_s20 = sadd.s32 1, %s2044_s25   ;;  %s2045_s22 = sld [smem:[#allocation15_spill]] }
  0x85   : > { %p23_p2 = scmp.ge.s32.totalorder %s26_s20, 4   ;;  %s2046_s17 = sld [smem:[#allocation18_spill]] }
  0x86   : > { %s2047_s28 = sld [smem:[#allocation17_spill]]  ;;  %s2048_s15 = smov %s1408_s16 }
  0x87   : > { %s2050_s18 = smov %s1420_s19 }
  0x88   :  { %25 = sbr.rel (!%p23_p2) target bundleno = 13 (0xd), region = 126 }
  0x8a   : > { %s2049_s16 = smov %s2045_s22 }
  0x8c   : > { %s2051_s19 = smov %s2047_s28 }
  0x8d   :  { %861 = vsyncpa [#allocation3], 1 }
  0x8e   :  { %863 = vsyncpa [#allocation3 + $0x1], 1 }
  0x8f   :  { %864 = vsyncpa [#allocation6], 1 }
  0x90   :  { %866 = vsyncpa [#allocation6 + $0x1], 1 }
  0x91   :  { %867 = vsyncpa [#allocation9], 1 }
  0x92   :  { %869 = vsyncpa [#allocation9 + $0x1], 1 }
  0x93   :  { %870 = vsyncpa [#allocation4], 1 }
  0x94   :  { %872 = vsyncpa [#allocation4 + $0x1], 1 }

</bundles_post_ra>
